<compile_context>
chip_gen: v7x
topology: tpu7x:2x2x1
jax: 0.10.0
libtpu: 0.0.40
codegen_flags: <defaults>
</compile_context>

<pallas_src>
import functools

import jax
import jax.numpy as jnp
import numpy as np
from jax.experimental import pallas as pl
from jax.experimental.pallas import tpu as pltpu


def make_pe_table(d_model: int, max_len: int) -> jnp.ndarray:
    """Deterministic positional-encoding table, identical to the PyTorch __init__."""
    position = np.arange(0, max_len, dtype=np.float32)[:, None]            # (max_len, 1)
    div_term = np.exp(np.arange(0, d_model, 2, dtype=np.float32)
                      * (-np.log(10000.0) / d_model))                      # (d_model/2,)
    pe = np.zeros((max_len, d_model), dtype=np.float32)
    pe[:, 0::2] = np.sin(position * div_term)
    pe[:, 1::2] = np.cos(position * div_term)
    return jnp.asarray(pe)                                                  # (max_len, d_model)


# ----------------------------- kernels --------------------------------------


def _pe_add_kernel(x_ref, pe_ref, o_ref):
    # x_ref: (TB, TN)  pe_ref: (1, TN)  -> sublane broadcast add
    o_ref[...] = (x_ref[...] + pe_ref[...]).astype(o_ref.dtype)


def _pe_add_dropout_kernel(x_ref, pe_ref, bits_ref, o_ref, *, keep_prob: float):
    y = x_ref[...] + pe_ref[...]
    # Integer threshold dropout: keep iff bits < keep_prob * 2^32.
    thr = jnp.uint32(min(int(round(keep_prob * 4294967296.0)), 4294967295))
    keep = bits_ref[...] < thr
    inv_keep = jnp.asarray(1.0 / keep_prob, dtype=y.dtype)
    o_ref[...] = jnp.where(keep, y * inv_keep, jnp.zeros_like(y)).astype(o_ref.dtype)


# ----------------------------- wrapper ---------------------------------------


def _choose_tiles(B: int, N: int):
    """Pick (TB, TN) block shape satisfying the (8,128) rule with ~1 MiB f32 tiles."""
    # Lane tile: multiple of 128 when the flat feature dim allows it, else full dim.
    if N % 128 == 0:
        tn = min(N, 2048)
    else:
        tn = N                       # full array dim is always legal
    # Row tile: keep TB*TN around 256K f32 elements (~1 MiB per buffer) so that
    # double-buffered x + bits + out (~6 MiB) fits v5e's 16 MiB scoped default
    # and leaves ample headroom on v7x's smaller VMEM.
    max_rows = max(1, (256 * 1024) // tn)
    if B <= max_rows:
        tb = B                       # full array dim is always legal
    else:
        tb = max(8, (max_rows // 8) * 8)   # divisible by 8
    return tb, tn


def positional_encoding_forward(x, pe_table, *, p: float = 0.5,
                                training: bool = True, rng_key=None):
    """x: (B, S, D); pe_table: (max_len, D); rng_key: jax PRNG key (training only)."""
    B, S, D = x.shape
    N = S * D

    # Glue: slice PE to seq_len, flatten everything to a lane-dense (B, S*D) layout.
    x_flat = x.reshape(B, N)
    pe_flat = pe_table[:S, :].reshape(1, N).astype(x.dtype)

    tb, tn = _choose_tiles(B, N)
    grid = (pl.cdiv(B, tb), pl.cdiv(N, tn))

    x_spec = pl.BlockSpec((tb, tn), lambda i, j: (i, j))
    pe_spec = pl.BlockSpec((1, tn), lambda i, j: (0, j))
    bits_spec = pl.BlockSpec((tb, tn), lambda i, j: (i, j))
    out_spec = pl.BlockSpec((tb, tn), lambda i, j: (i, j))

    use_dropout = training and p > 0.0
    dtype_bytes = jnp.dtype(x.dtype).itemsize

    if use_dropout:
        if rng_key is None:
            raise ValueError("rng_key is required when training with p > 0")
        bits = jax.random.bits(rng_key, (B, N), dtype=jnp.uint32)
        kernel = functools.partial(_pe_add_dropout_kernel, keep_prob=1.0 - p)
        in_specs = [x_spec, pe_spec, bits_spec]
        args = (x_flat, pe_flat, bits)
        bytes_accessed = 2 * B * N * dtype_bytes + N * dtype_bytes + B * N * 4
        flops = 3 * B * N
    else:
        kernel = _pe_add_kernel
        in_specs = [x_spec, pe_spec]
        args = (x_flat, pe_flat)
        bytes_accessed = 2 * B * N * dtype_bytes + N * dtype_bytes
        flops = B * N

    out_flat = pl.pallas_call(
        kernel,
        out_shape=jax.ShapeDtypeStruct((B, N), x.dtype),
        grid=grid,
        in_specs=in_specs,
        out_specs=out_spec,
        compiler_params=pltpu.CompilerParams(
            # Purely elementwise, no cross-iteration state -> both axes parallel
            # (lets v7x shard the grid across its 2 TensorCores).
            dimension_semantics=("parallel", "parallel"),
        ),
        cost_estimate=pl.CostEstimate(
            flops=flops, transcendentals=0, bytes_accessed=bytes_accessed),
    )(*args)

    return out_flat.reshape(B, S, D)


# ----------------------------- demo / self-test -------------------------------


if __name__ == "__main__":
    key = jax.random.PRNGKey(0)
    k_x, k_drop = jax.random.split(key)

    B, S, D = 2, 8, 32
    max_len = 64
    p = 0.5

    x = jax.random.normal(k_x, (B, S, D), dtype=jnp.float32)
    pe_table = make_pe_table(d_model=D, max_len=max_len)

    ref_add = np.asarray(x) + np.asarray(pe_table)[None, :S, :]

    # Eval mode (dropout = identity): exact check against pure reference.
    out_eval = jax.block_until_ready(
        positional_encoding_forward(x, pe_table, p=p, training=False))
    np.testing.assert_allclose(np.asarray(out_eval), ref_add, rtol=1e-6, atol=1e-6)

    # Training mode: reproduce the exact mask from the same key and compare.
    out_train = jax.block_until_ready(
        positional_encoding_forward(x, pe_table, p=p, training=True, rng_key=k_drop))
    assert out_train.shape == (B, S, D)
    bits = np.asarray(jax.random.bits(k_drop, (B, S * D), dtype=jnp.uint32)).reshape(B, S, D)
    thr = np.uint32(min(int(round((1.0 - p) * 4294967296.0)), 4294967295))
    keep = bits < thr
    ref_train = np.where(keep, ref_add * (1.0 / (1.0 - p)), 0.0).astype(np.float32)
    np.testing.assert_allclose(np.asarray(out_train), ref_train, rtol=1e-5, atol=1e-6)

    print("KERNEL_OK")
</pallas_src>

<mosaic_0001>
module attributes {stable_mosaic.version = 11 : i64} {
  func.func @_pe_add_kernel(%arg0: i32, %arg1: i32, %arg2: memref<2x256xf32, #tpu.memory_space<vmem>>, %arg3: memref<1x256xf32, #tpu.memory_space<vmem>>, %arg4: memref<2x256xf32, #tpu.memory_space<vmem>>) attributes {dimension_semantics = [#tpu.dimension_semantics<parallel>, #tpu.dimension_semantics<parallel>], iteration_bounds = array<i64: 1, 1>, scalar_prefetch = 0 : i64, scratch_operands = 0 : i64, tpu.core_type = #tpu.core_type<tc>, window_params = [{transform_indices = @transform_0, window_bounds = array<i64: 2, 256>}, {transform_indices = @transform_1, window_bounds = array<i64: 1, 256>}, {transform_indices = @transform_2, window_bounds = array<i64: 2, 256>}]} {
    %c0 = arith.constant 0 : index
    %c0_0 = arith.constant 0 : index
    %0 = vector.load %arg2[%c0, %c0_0] : memref<2x256xf32, #tpu.memory_space<vmem>>, vector<2x256xf32>
    %c0_1 = arith.constant 0 : index
    %c0_2 = arith.constant 0 : index
    %1 = vector.load %arg3[%c0_1, %c0_2] : memref<1x256xf32, #tpu.memory_space<vmem>>, vector<1x256xf32>
    %2 = vector.broadcast %1 : vector<1x256xf32> to vector<2x256xf32>
    %3 = arith.addf %0, %2 : vector<2x256xf32>
    %c0_3 = arith.constant 0 : index
    %c0_4 = arith.constant 0 : index
    %4 = vector.load %arg4[%c0_3, %c0_4] : memref<2x256xf32, #tpu.memory_space<vmem>>, vector<2x256xf32>
    tpu.vector_store %arg4[%c0_3, %c0_4], %3 {strides = array<i32>} : memref<2x256xf32, #tpu.memory_space<vmem>>, vector<2x256xf32>,
    return
  }
  func.func @transform_0(%arg0: i32, %arg1: i32) -> (i32, i32) {
    %c0_i32 = arith.constant 0 : i32
    return %arg0, %arg1 : i32, i32
  }
  func.func @transform_1(%arg0: i32, %arg1: i32) -> (i32, i32) {
    %c0_i32 = arith.constant 0 : i32
    %c0_i32_0 = arith.constant 0 : i32
    return %c0_i32, %arg1 : i32, i32
  }
  func.func @transform_2(%arg0: i32, %arg1: i32) -> (i32, i32) {
    %c0_i32 = arith.constant 0 : i32
    return %arg0, %arg1 : i32, i32
  }
}

</mosaic_0001>

<bundles_post_ra>
// kernel: tpu_custom_call.1
= control target key start
LH: loop header
LB: loop body
LE: loop exit
PB: predicated region body
PF: predicated region fallthrough
CT: control target
= control target key end

     0   :  { %7 = vsyncpa [#allocation3], 0  ;;  %s157_s0 = inlined_call_operand.hbm [shape: f32[2,256], index: 0, kind: input, shape index: {}]   ;;  %s158_s1 = inlined_call_operand.vmem [shape: f32[1,256], index: 1, kind: input, shape index: {}]   ;;  %s159_s2 = inlined_call_operand.hbm [shape: f32[2,256], index: 2, kind: output, shape index: {}]  }
   0x1   :  { %8 = vsyncpa [#allocation4], 0  ;;  %s112_s9 = smov [#allocation2]   ;;  %s64_s13 = scalar_lea.hbm %s157_s0, 64 }
   0x2   :  { %s15_s10 = sshll.u32 %s112_s9, 4  ;;  %p65_p0 = scmp.ne.s32.totalorder %s157_s0, %s64_s13  ;;  %s16_s10 = int_to_ptr.vmem [resolvable:$true] %s15_s10 }
   0x3   :  { %p68_p1 = scmp.lt.u32.totalorder %s64_s13, %s157_s0 }
   0x5   :  { %p70_p2 = pnand %p68_p1, %p65_p0 }
   0x7   :  { %73 = shalt.err (!%p70_p2)
}
   0x8   :  { %s74_s18 = scalar_lea.vmem %s16_s10, 64  ;;  %p79_p4 = scmp.lt.s32.totalorder %s16_s10, %s16_s10 }
   0x9   :  { %p75_p3 = scmp.ne.s32.totalorder %s16_s10, %s74_s18  ;;  %p80_p5 = scmp.lt.s32.totalorder %s74_s18, %s74_s18 }
   0xb   :  { %p81_p6 = por %p80_p5, %p79_p4 }
   0xd   :  { %p82_p7 = pnand %p81_p6, %p75_p3 }
   0xf   :  { %85 = shalt.err (!%p82_p7)
}
  0x10   :  { %18 = dma.hbm_to_vmem [thread:$0]  %s157_s0, 64, %s16_s10, [#allocation3]  }
  0x11   :  { %108 = dma.done.wait [#allocation3], 64  }
  0x12   :  { %109 = vsyncadd [#allocation3], 4294967232  ;;  %v27_v0 = vlaneseq  ;;  %v113_v1 = vmov 1983009808   ;;  %v25_v7 = vld [vmem:[%s158_s1] sm:$0x3] }
  0x13   :  { %v37_v2 = vunpack.c.l.s4 %v113_v1  ;;  %v24_v12 = vld [vmem:[#allocation2] sm:$0xf]  ;;  %s114_s23 = smov [#allocation5]  }
  0x14   :  { %v28_v3 = vshrl.u32 %v27_v0, 7  ;;  %s52_s0 = sshll.u32 %s114_s23, 4  ;;  %s53_s0 = int_to_ptr.vmem [resolvable:$true] %s52_s0 }
  0x15   :  { %v38_v6 = vunpack.c.0.s8 %v37_v2  ;;  %s86_s24 = scalar_lea.vmem %s53_s0, 64  ;;  %p91_p9 = scmp.lt.s32.totalorder %s53_s0, %s53_s0 }
  0x16   :  { %v29_v4 = vsub.s32 0, %v28_v3  ;;  %v33_v5 = vsub.s32 1, %v28_v3  ;;  %p87_p8 = scmp.ne.s32.totalorder %s53_s0, %s86_s24  ;;  %p92_p10 = scmp.lt.s32.totalorder %s86_s24, %s86_s24 }
  0x17   :  { %v41_v10 = vsub.s32 %v38_v6, %v28_v3 }
  0x18   :  { %v30_v8 = vrot.slane %v25_v7, %v29_v4  ;;  %v34_v9 = vrot.slane %v25_v7, %v33_v5  ;;  %p93_p11 = por %p92_p10, %p91_p9 }
  0x1a   :  { %v35_v11 = vcombine.low %v30_v8, %v34_v9  ;;  %p94_p12 = pnand %p93_p11, %p87_p8 }
  0x1c   :  { %v42_v13 = vrot.slane %v35_v11, %v41_v10 }
  0x1e   :  { %v44_v14 = vadd.f32 %v42_v13, %v24_v12 }
  0x20   :  { %45 = vst [vmem:[#allocation5] sm:$0xf] %v44_v14 }
  0x21   :  { %97 = shalt.err (!%p94_p12)
}
  0x22   :  { %s98_s26 = scalar_lea.hbm %s159_s2, 64 }
  0x23   :  { %p99_p13 = scmp.ne.s32.totalorder %s159_s2, %s98_s26  ;;  %p102_p0 = scmp.lt.u32.totalorder %s98_s26, %s159_s2 }
  0x25   :  { %p104_p1 = pnand %p102_p0, %p99_p13 }
  0x27   :  { %107 = shalt.err (!%p104_p1)
}
  0x28   :  { %55 = dma.vmem_to_hbm [thread:$0]  %s53_s0, 64, %s159_s2, [#allocation4]  }
  0x29   :  { %110 = dma.done.wait [#allocation4], 64  }
  0x2a   :  { %111 = vsyncadd [#allocation4], 4294967232 }
  0x2b   :  { %59 = vsyncpa [#allocation3], 1 }
  0x2c   :  { %60 = vsyncpa [#allocation4], 1 }

</bundles_post_ra>
